<compile_context>
chip_gen: v5e
topology: v5e:2x2
jax: 0.10.0
libtpu: 0.0.40
codegen_flags: <defaults>
</compile_context>

<pallas_src>
import math

import jax
import jax.numpy as jnp
from jax import lax
from jax.experimental import pallas as pl
from jax.experimental.pallas import tpu as pltpu

MIN_NORM = 1e-15
EPS_F32 = 4e-3          # PoincareBall.eps[torch.float32]


def _cdiv(a: int, b: int) -> int:
    return -(-a // b)


def _round_up(x: int, m: int) -> int:
    return ((x + m - 1) // m) * m


def _choose_tile(N: int, tile: int) -> int:
    """Tile for both grid axes: multiple of 128 (lane/MXU friendly), capped by
    `tile`, and guaranteeing >= 2 row tiles when N > 128 so v7x megacore can
    shard the 'parallel' row axis. N <= 128 -> single exact tile (no padding)."""
    if N <= 128:
        return N
    tile = max(128, tile)
    t = min(tile, _round_up(N, 128))
    if _cdiv(N, t) < 2:
        t = _round_up(_cdiv(N, 2), 128)
    return t


# --------------------------------------------------------------------------- #
# Prologue: logmap0(x, c) and the DenseAtt score projections (hoisted out of   #
# the N^2 loop so artanh / log1p / the (D,2) projection run exactly once).     #
# x_tangent is emitted already in the MXU operand dtype (bf16) so the main     #
# kernel never re-casts it.                                                    #
# --------------------------------------------------------------------------- #
def _make_prologue_kernel(c: float):
    sqrt_c = math.sqrt(c)
    inv_sqrt_c = 1.0 / sqrt_c

    def kernel(x_ref, w_ref, b_ref, xt_ref, left_ref, right_ref):
        x = x_ref[...].astype(jnp.float32)                             # (TM, D)

        # logmap0 via rsqrt (no divides): ||x|| = s * rsqrt(s), 1/||x|| = rsqrt(s)
        s_sq = jnp.maximum(jnp.sum(x * x, axis=-1, keepdims=True),
                           MIN_NORM * MIN_NORM)
        inv_norm = lax.rsqrt(s_sq)
        x_norm = s_sq * inv_norm
        arg = jnp.clip(sqrt_c * x_norm, -1.0 + 1e-7, 1.0 - 1e-7)
        artanh = 0.5 * (jnp.log1p(arg) - jnp.log1p(-arg))
        x_t = (inv_sqrt_c * artanh * inv_norm) * x
        xt_ref[...] = x_t.astype(xt_ref.dtype)                         # bf16 once

        # DenseAtt linear split: Linear([xi;xj]) = w_left·xi + w_right·xj + b.
        # 2-wide output -> VPU multiply + lane reduce (never worth the MXU).
        w = w_ref[...].astype(jnp.float32)                             # (2, D)
        b = b_ref[0, 0]                                                # SMEM scalar
        left_ref[...] = jnp.sum(x_t * w[0:1, :], axis=-1, keepdims=True) + b
        right_ref[...] = jnp.sum(x_t * w[1:2, :], axis=-1, keepdims=True)

    return kernel


def _prologue(x_pad, w, b, c: float, tile_m: int, xt_dtype):
    Np, D = x_pad.shape
    kernel = _make_prologue_kernel(c)
    return pl.pallas_call(
        kernel,
        out_shape=(jax.ShapeDtypeStruct((Np, D), xt_dtype),
                   jax.ShapeDtypeStruct((Np, 1), jnp.float32),
                   jax.ShapeDtypeStruct((Np, 1), jnp.float32)),
        grid_spec=pltpu.PrefetchScalarGridSpec(
            num_scalar_prefetch=0,
            grid=(Np // tile_m,),
            in_specs=[
                pl.BlockSpec((tile_m, D), lambda i: (i, 0)),
                pl.BlockSpec((2, D), lambda i: (0, 0)),
                pl.BlockSpec(memory_space=pltpu.MemorySpace.SMEM),      # bias scalar
            ],
            out_specs=[
                pl.BlockSpec((tile_m, D), lambda i: (i, 0)),
                pl.BlockSpec((tile_m, 1), lambda i: (i, 0)),
                pl.BlockSpec((tile_m, 1), lambda i: (i, 0)),
            ],
        ),
        compiler_params=pltpu.CompilerParams(
            dimension_semantics=("parallel",)),
    )(x_pad, w, b)


# --------------------------------------------------------------------------- #
# Main tiled kernel: DenseAtt tile + masked aggregation + expmap0/proj.        #
# grid = (rows "parallel" x cols "arbitrary"); adj streamed unpadded in its    #
# native dtype; ragged last tiles masked with iota vs the static N.            #
# --------------------------------------------------------------------------- #
def _make_main_kernel(c: float, n_valid: int, t: int, need_mask: bool,
                      att_dtype, agg_dtype):
    sqrt_c = math.sqrt(c)
    inv_sqrt_c = 1.0 / sqrt_c
    maxnorm = (1.0 - EPS_F32) / sqrt_c

    def kernel(left_ref, right_ref, adj_ref, xt_ref, o_ref, att_ref):
        i = pl.program_id(0)
        k = pl.program_id(1)

        @pl.when(k == 0)
        def _():
            o_ref[...] = jnp.zeros_like(o_ref)      # output block is the accumulator

        # DenseAtt tile: adj * sigmoid(left_i + right_j) — fused single pass.
        # sigmoid via tanh identity: one EUP push per vreg instead of two.
        logits = left_ref[...] + right_ref[...]            # (TM,1)+(1,TK)->(TM,TK)
        att = 0.5 * jnp.tanh(0.5 * logits) + 0.5
        adj = adj_ref[...].astype(jnp.float32)             # f32/bf16/int8 all OK
        if need_mask:
            # Ragged last tiles of the *unpadded* adj: out-of-bounds reads are
            # garbage -> zero them (also keeps the padded adj_att region at 0).
            row = lax.broadcasted_iota(jnp.int32, (t, 1), 0) + i * t
            col = lax.broadcasted_iota(jnp.int32, (1, t), 1) + k * t
            adj = jnp.where((row < n_valid) & (col < n_valid), adj, 0.0)

        adj_att = (adj * att).astype(att_dtype)
        att_ref[...] = adj_att                             # bf16 writeback (halved)

        # Aggregation hot path: reuse the same bf16 tile as MXU LHS, bf16 RHS
        # (VMEM-resident x_tangent), f32 accumulation directly in o_ref.
        start = k * t
        if t % 128 == 0:
            start = pl.multiple_of(start, 128)
        xt = xt_ref[pl.ds(start, t), :]
        o_ref[...] += jnp.dot(adj_att.astype(agg_dtype), xt.astype(agg_dtype),
                              preferred_element_type=jnp.float32)

        # Finalize: expmap0 + proj (rsqrt instead of sqrt + divides).
        @pl.when(k == pl.num_programs(1) - 1)
        def _():
            support = o_ref[...]
            s_sq = jnp.maximum(jnp.sum(support * support, axis=-1, keepdims=True),
                               MIN_NORM * MIN_NORM)
            inv_n = lax.rsqrt(s_sq)
            u_norm = s_sq * inv_n
            gamma = jnp.tanh(sqrt_c * u_norm) * support * (inv_sqrt_c * inv_n)
            g_sq = jnp.maximum(jnp.sum(gamma * gamma, axis=-1, keepdims=True),
                               MIN_NORM * MIN_NORM)
            inv_g = lax.rsqrt(g_sq)
            g_norm = g_sq * inv_g
            o_ref[...] = jnp.where(g_norm > maxnorm,
                                   gamma * (inv_g * maxnorm),
                                   gamma).astype(o_ref.dtype)

    return kernel


def hyp_agg(x, adj, w, b, c: float, *, tile: int = 512,
            att_dtype=jnp.bfloat16, agg_dtype=jnp.bfloat16):
    """x: (N, D) Poincare-ball points; adj: (N, N) dense adjacency in any dtype
    (f32 for weighted graphs, int8/bf16 fine for 0/1 masks — streamed as-is,
    never padded or cast in the wrapper); w: (2, D) = [w_left; w_right] split of
    nn.Linear(2D, 1).weight; b: (1, 1) bias.

    Returns (output, adj_att):
      output : (N, D) f32      — proj(expmap0(adj_att @ logmap0(x)))
      adj_att: (Np, Np)        — DenseAtt output, att_dtype (bf16 by default),
               Np = N rounded up to the tile; entries at index >= N are exactly 0
               (returned padded to avoid an extra O(N^2) slice pass).
    """
    N, D = x.shape
    assert adj.shape == (N, N)

    t = _choose_tile(N, tile)
    Np = _round_up(N, t)
    g = Np // t

    # Only O(N*D) wrapper work — the O(N^2) adjacency is streamed untouched.
    x32 = x.astype(jnp.float32)
    if Np != N:
        x32 = jnp.pad(x32, ((0, Np - N), (0, 0)))

    x_t, left, right = _prologue(x32, w.astype(jnp.float32),
                                 b.astype(jnp.float32), c, t, agg_dtype)
    right_row = right.reshape(1, Np)          # free row-major reshape, lane-major

    kernel = _make_main_kernel(c, N, t, Np != N, att_dtype, agg_dtype)

    adj_itemsize = jnp.dtype(adj.dtype).itemsize
    att_itemsize = jnp.dtype(att_dtype).itemsize
    cost = pl.CostEstimate(
        flops=int(2 * Np * Np * D + 6 * Np * Np),
        transcendentals=int(Np * Np),
        bytes_accessed=int(N * N * adj_itemsize + Np * Np * att_itemsize
                           + Np * D * (4 + 2) + 2 * Np * g * 4),
    )

    cp_kwargs = dict(dimension_semantics=("parallel", "arbitrary"))
    if t >= 1024:
        # big-tile option (v6e): cover double-buffered tiles + f32 temporaries.
        cp_kwargs["vmem_limit_bytes"] = 48 * 1024 * 1024

    out_pad, adj_att = pl.pallas_call(
        kernel,
        out_shape=(jax.ShapeDtypeStruct((Np, D), jnp.float32),
                   jax.ShapeDtypeStruct((Np, Np), att_dtype)),
        grid_spec=pltpu.PrefetchScalarGridSpec(
            num_scalar_prefetch=0,
            grid=(g, g),
            in_specs=[
                pl.BlockSpec((t, 1), lambda i, k: (i, 0)),   # left scores (+bias)
                pl.BlockSpec((1, t), lambda i, k: (0, k)),   # right scores, lane-major
                pl.BlockSpec((t, t), lambda i, k: (i, k)),   # adj tile, native dtype
                pl.BlockSpec((Np, D), lambda i, k: (0, 0)),  # x_tangent, VMEM-resident
            ],
            out_specs=[
                pl.BlockSpec((t, D), lambda i, k: (i, 0)),   # accumulator / output
                pl.BlockSpec((t, t), lambda i, k: (i, k)),   # DenseAtt adj_att (bf16)
            ],
        ),
        compiler_params=pltpu.CompilerParams(**cp_kwargs),
        cost_estimate=cost,
    )(left, right_row, adj, x_t)

    return out_pad[:N], adj_att


# --------------------------------------------------------------------------- #
# Pure-JAX f32 reference for verification.                                     #
# --------------------------------------------------------------------------- #
def hyp_agg_reference(x, adj, w, b, c: float):
    sqrt_c = math.sqrt(c)
    x = x.astype(jnp.float32)
    adj = adj.astype(jnp.float32)
    x_norm = jnp.maximum(jnp.linalg.norm(x, axis=-1, keepdims=True), MIN_NORM)
    arg = jnp.clip(sqrt_c * x_norm, -1.0 + 1e-7, 1.0 - 1e-7)
    x_t = (1.0 / sqrt_c) * jnp.arctanh(arg) / x_norm * x
    logits = (x_t @ w[0])[:, None] + (x_t @ w[1])[None, :] + b[0, 0]
    adj_att = adj * jax.nn.sigmoid(logits)
    support = adj_att @ x_t
    u_norm = jnp.maximum(jnp.linalg.norm(support, axis=-1, keepdims=True), MIN_NORM)
    gamma = jnp.tanh(sqrt_c * u_norm) * support / (sqrt_c * u_norm)
    g_norm = jnp.maximum(jnp.linalg.norm(gamma, axis=-1, keepdims=True), MIN_NORM)
    maxnorm = (1.0 - EPS_F32) / sqrt_c
    out = jnp.where(g_norm > maxnorm, gamma / g_norm * maxnorm, gamma)
    return out, adj_att


if __name__ == "__main__":
    c = 1.0
    D = 32
    # case 1: single exact tile, weighted f32 adjacency (full-precision adj path)
    # case 2: ragged multi-tile (t=256, grid 2x2, Np=512), binary int8 adjacency
    #         streamed as-is (halved adj read; exercises in-kernel iota masking).
    cases = [(64, jnp.float32, True), (300, jnp.int8, False)]

    for N, adj_dtype, weighted in cases:
        key = jax.random.PRNGKey(0)
        kx, kadj, kw_, kb, kwt = jax.random.split(key, 5)

        # Points inside the Poincare ball (small norm).
        x = 0.1 * jax.random.normal(kx, (N, D), dtype=jnp.float32)

        # Symmetric-ish dense adjacency with self loops.
        mask = (jax.random.uniform(kadj, (N, N)) < 0.2).astype(jnp.float32)
        mask = jnp.clip(mask + mask.T + jnp.eye(N, dtype=jnp.float32), 0.0, 1.0)
        if weighted:
            wts = jax.random.uniform(kwt, (N, N), minval=0.1, maxval=1.0)
            adj_f32 = mask * wts
        else:
            adj_f32 = mask
        adj_in = adj_f32.astype(adj_dtype)

        # DenseAtt.linear: nn.Linear(2*D, 1) -> weight (1, 2*D), bias (1,).
        bound = 1.0 / math.sqrt(2 * D)
        w_full = jax.random.uniform(kw_, (2 * D,), minval=-bound, maxval=bound,
                                    dtype=jnp.float32)
        w = jnp.stack([w_full[:D], w_full[D:]], axis=0)          # (2, D)
        b = jax.random.uniform(kb, (1, 1), minval=-bound, maxval=bound,
                               dtype=jnp.float32)

        out, adj_att = hyp_agg(x, adj_in, w, b, c)
        out = jax.block_until_ready(out)
        adj_att = jax.block_until_ready(adj_att)

        out_ref, att_ref = hyp_agg_reference(x, adj_f32, w, b, c)

        Np = adj_att.shape[0]
        assert out.shape == (N, D)
        assert adj_att.shape == (Np, Np) and Np >= N
        assert bool(jnp.all(jnp.isfinite(out)))
        assert bool(jnp.all(jnp.isfinite(adj_att.astype(jnp.float32))))
        # DenseAtt output written in bf16 (halves the N^2 writeback) -> bf16 tol.
        assert bool(jnp.allclose(adj_att[:N, :N].astype(jnp.float32), att_ref,
                                 atol=1e-2, rtol=1e-2))
        if Np > N:
            # padded region is exactly zero (masked in-kernel)
            assert bool(jnp.all(adj_att[N:, :] == 0))
            assert bool(jnp.all(adj_att[:, N:] == 0))
        # Aggregation uses bf16 MXU operands with f32 accumulation -> relaxed tol.
        assert bool(jnp.allclose(out, out_ref, atol=1e-2, rtol=1e-2))

    print("KERNEL_OK")
</pallas_src>

<mosaic_0001>
module attributes {stable_mosaic.version = 11 : i64} {
  func.func @kernel(%arg0: i32, %arg1: memref<64x32xf32, #tpu.memory_space<vmem>>, %arg2: memref<2x32xf32, #tpu.memory_space<vmem>>, %arg3: memref<1x1xf32, #tpu.memory_space<smem>>, %arg4: memref<64x32xbf16, #tpu.memory_space<vmem>>, %arg5: memref<64x1xf32, #tpu.memory_space<vmem>>, %arg6: memref<64x1xf32, #tpu.memory_space<vmem>>) attributes {dimension_semantics = [#tpu.dimension_semantics<parallel>], iteration_bounds = array<i64: 1>, scalar_prefetch = 0 : i64, scratch_operands = 0 : i64, tpu.core_type = #tpu.core_type<tc>, window_params = [{transform_indices = @transform_0, window_bounds = array<i64: 64, 32>}, {pipeline_mode = #tpu.pipeline_mode<synchronous>, transform_indices = @transform_1, window_bounds = array<i64: 2, 32>}, {transform_indices = @transform_2, window_bounds = array<i64: 1, 1>}, {transform_indices = @transform_3, window_bounds = array<i64: 64, 32>}, {transform_indices = @transform_4, window_bounds = array<i64: 64, 1>}, {transform_indices = @transform_5, window_bounds = array<i64: 64, 1>}]} {
    %c0 = arith.constant 0 : index
    %c0_0 = arith.constant 0 : index
    %0 = vector.load %arg1[%c0, %c0_0] : memref<64x32xf32, #tpu.memory_space<vmem>>, vector<64x32xf32>
    %1 = arith.mulf %0, %0 : vector<64x32xf32>
    %cst = arith.constant dense<0.000000e+00> : vector<64xf32>
    %2 = vector.multi_reduction <add>, %1, %cst [1] : vector<64x32xf32> to vector<64xf32>
    %3 = vector.shape_cast %2 : vector<64xf32> to vector<64x1xf32>
    %cst_1 = arith.constant 1.000000e-30 : f32
    %4 = vector.broadcast %cst_1 : f32 to vector<64x1xf32>
    %5 = arith.maximumf %3, %4 : vector<64x1xf32>
    %6 = math.rsqrt %5 : vector<64x1xf32>
    %7 = arith.mulf %5, %6 : vector<64x1xf32>
    %cst_2 = arith.constant 1.000000e+00 : f32
    %8 = vector.broadcast %cst_2 : f32 to vector<64x1xf32>
    %9 = arith.mulf %8, %7 : vector<64x1xf32>
    %cst_3 = arith.constant -0.99999988 : f32
    %cst_4 = arith.constant 0.99999988 : f32
    %10 = vector.broadcast %cst_3 : f32 to vector<64x1xf32>
    %11 = arith.maximumf %10, %9 : vector<64x1xf32>
    %12 = vector.broadcast %cst_4 : f32 to vector<64x1xf32>
    %13 = arith.minimumf %12, %11 : vector<64x1xf32>
    %14 = math.log1p %13 : vector<64x1xf32>
    %cst_5 = arith.constant 0.000000e+00 : f32
    %15 = vector.broadcast %cst_5 : f32 to vector<64x1xf32>
    %16 = arith.subf %15, %13 : vector<64x1xf32>
    %17 = math.log1p %16 : vector<64x1xf32>
    %18 = arith.subf %14, %17 : vector<64x1xf32>
    %cst_6 = arith.constant 5.000000e-01 : f32
    %19 = vector.broadcast %cst_6 : f32 to vector<64x1xf32>
    %20 = arith.mulf %19, %18 : vector<64x1xf32>
    %cst_7 = arith.constant 1.000000e+00 : f32
    %21 = vector.broadcast %cst_7 : f32 to vector<64x1xf32>
    %22 = arith.mulf %21, %20 : vector<64x1xf32>
    %23 = arith.mulf %22, %6 : vector<64x1xf32>
    %24 = vector.broadcast %23 : vector<64x1xf32> to vector<64x32xf32>
    %25 = arith.mulf %24, %0 : vector<64x32xf32>
    %26 = arith.truncf %25 : vector<64x32xf32> to vector<64x32xbf16>
    %c0_8 = arith.constant 0 : index
    %c0_9 = arith.constant 0 : index
    %27 = vector.load %arg4[%c0_8, %c0_9] : memref<64x32xbf16, #tpu.memory_space<vmem>>, vector<64x32xbf16>
    tpu.vector_store %arg4[%c0_8, %c0_9], %26 {strides = array<i32>} : memref<64x32xbf16, #tpu.memory_space<vmem>>, vector<64x32xbf16>,
    %c0_10 = arith.constant 0 : index
    %c0_11 = arith.constant 0 : index
    %28 = vector.load %arg2[%c0_10, %c0_11] : memref<2x32xf32, #tpu.memory_space<vmem>>, vector<2x32xf32>
    %c0_12 = arith.constant 0 : index
    %c0_13 = arith.constant 0 : index
    %29 = memref.load %arg3[%c0_12, %c0_13] : memref<1x1xf32, #tpu.memory_space<smem>>
    %30 = vector.extract_strided_slice %28 {offsets = [0, 0], sizes = [1, 32], strides = [1, 1]} : vector<2x32xf32> to vector<1x32xf32>
    %31 = vector.broadcast %30 : vector<1x32xf32> to vector<64x32xf32>
    %32 = arith.mulf %25, %31 : vector<64x32xf32>
    %cst_14 = arith.constant dense<0.000000e+00> : vector<64xf32>
    %33 = vector.multi_reduction <add>, %32, %cst_14 [1] : vector<64x32xf32> to vector<64xf32>
    %34 = vector.shape_cast %33 : vector<64xf32> to vector<64x1xf32>
    %35 = vector.broadcast %29 : f32 to vector<64x1xf32>
    %36 = arith.addf %34, %35 : vector<64x1xf32>
    %c0_15 = arith.constant 0 : index
    %c0_16 = arith.constant 0 : index
    %37 = vector.load %arg5[%c0_15, %c0_16] : memref<64x1xf32, #tpu.memory_space<vmem>>, vector<64x1xf32>
    tpu.vector_store %arg5[%c0_15, %c0_16], %36 {strides = array<i32>} : memref<64x1xf32, #tpu.memory_space<vmem>>, vector<64x1xf32>,
    %38 = vector.extract_strided_slice %28 {offsets = [1, 0], sizes = [1, 32], strides = [1, 1]} : vector<2x32xf32> to vector<1x32xf32>
    %39 = vector.broadcast %38 : vector<1x32xf32> to vector<64x32xf32>
    %40 = arith.mulf %25, %39 : vector<64x32xf32>
    %cst_17 = arith.constant dense<0.000000e+00> : vector<64xf32>
    %41 = vector.multi_reduction <add>, %40, %cst_17 [1] : vector<64x32xf32> to vector<64xf32>
    %42 = vector.shape_cast %41 : vector<64xf32> to vector<64x1xf32>
    %c0_18 = arith.constant 0 : index
    %c0_19 = arith.constant 0 : index
    %43 = vector.load %arg6[%c0_18, %c0_19] : memref<64x1xf32, #tpu.memory_space<vmem>>, vector<64x1xf32>
    tpu.vector_store %arg6[%c0_18, %c0_19], %42 {strides = array<i32>} : memref<64x1xf32, #tpu.memory_space<vmem>>, vector<64x1xf32>,
    return
  }
  func.func @transform_0(%arg0: i32) -> (i32, i32) {
    %c0_i32 = arith.constant 0 : i32
    %c0_i32_0 = arith.constant 0 : i32
    return %arg0, %c0_i32 : i32, i32
  }
  func.func @transform_1(%arg0: i32) -> (i32, i32) {
    %c0_i32 = arith.constant 0 : i32
    %c0_i32_0 = arith.constant 0 : i32
    %c0_i32_1 = arith.constant 0 : i32
    return %c0_i32, %c0_i32_0 : i32, i32
  }
  func.func @transform_2(%arg0: i32) -> (i32, i32) {
    %c0_i32 = arith.constant 0 : i32
    %c0_i32_0 = arith.constant 0 : i32
    %c0_i32_1 = arith.constant 0 : i32
    return %c0_i32, %c0_i32_0 : i32, i32
  }
  func.func @transform_3(%arg0: i32) -> (i32, i32) {
    %c0_i32 = arith.constant 0 : i32
    %c0_i32_0 = arith.constant 0 : i32
    return %arg0, %c0_i32 : i32, i32
  }
  func.func @transform_4(%arg0: i32) -> (i32, i32) {
    %c0_i32 = arith.constant 0 : i32
    %c0_i32_0 = arith.constant 0 : i32
    return %arg0, %c0_i32 : i32, i32
  }
  func.func @transform_5(%arg0: i32) -> (i32, i32) {
    %c0_i32 = arith.constant 0 : i32
    %c0_i32_0 = arith.constant 0 : i32
    return %arg0, %c0_i32 : i32, i32
  }
}

</mosaic_0001>

<bundles_post_ra>
// kernel: tpu_custom_call.1
= control target key start
LH: loop header
LB: loop body
LE: loop exit
PB: predicated region body
PF: predicated region fallthrough
CT: control target
= control target key end

     0   :  { %vm34_vm0 = vcmask 261120   ;;  %s1015_s0 = inlined_call_operand.vmem [shape: f32[64,32], index: 0, kind: input, shape index: {}]   ;;  %s1016_s1 = inlined_call_operand.vmem [shape: f32[2,32], index: 1, kind: input, shape index: {}]   ;;  %s1017_s3 = inlined_call_operand.vmem [shape: bf16[64,32], index: 3, kind: output, shape index: {0}]   ;;  %s1018_s2 = inlined_call_operand.<no memory space> [shape: f32[1,1], index: 2, kind: input, shape index: {}]   ;;  %s1019_s4 = inlined_call_operand.vmem [shape: f32[64,1], index: 4, kind: output, shape index: {1}]   ;;  %s1020_s5 = inlined_call_operand.vmem [shape: f32[64,1], index: 5, kind: output, shape index: {2}]  }
   0x1   :  { %v567_v0 = vld [vmem:[%s1015_s0 + $0x20] sm:$0xff]  ;;  %v572_v1 = vld [vmem:[%s1015_s0 + $0x10] sm:$0xff]  ;;  %v588_v6 = vld [vmem:[%s1015_s0 + $0x28] sm:$0xff] }
   0x2   :  { %v577_v2 = vld [vmem:[%s1015_s0] sm:$0xff]  ;;  %v30_v3 = vmul.f32 %v567_v0, %v567_v0  ;;  %v28_v4 = vmul.f32 %v572_v1, %v572_v1  ;;  %v593_v7 = vld [vmem:[%s1015_s0 + $0x18] sm:$0xff]  ;;  %v601_v11 = vld [vmem:[%s1015_s0 + $0x8] sm:$0xff]  ;;  %v31_v12 = vmul.f32 %v588_v6, %v588_v6 }
   0x3   :  { %v26_v5 = vmul.f32 %v577_v2, %v577_v2  ;;  %v29_v13 = vmul.f32 %v593_v7, %v593_v7  ;;  %v27_v14 = vmul.f32 %v601_v11, %v601_v11  ;;  %v615_v18 = vld [vmem:[%s1015_s0 + $0x38] sm:$0xff]  ;;  %v620_v19 = vld [vmem:[%s1015_s0 + $0x30] sm:$0xff] }
   0x4   :  { %v47_v8 = vsel %vm34_vm0, %v30_v3, 0.0  ;;  %v41_v9 = vsel %vm34_vm0, %v28_v4, 0.0  ;;  %v50_v15 = vsel %vm34_vm0, %v31_v12, 0.0  ;;  %v33_v20 = vmul.f32 %v615_v18, %v615_v18 }
   0x5   :  { %v35_v10 = vsel %vm34_vm0, %v26_v5, 0.0  ;;  %48 = vadd.xlane.f32.xlu2 %v47_v8  ;;  %42 = vadd.xlane.f32.xlu1 %v41_v9  ;;  %v44_v16 = vsel %vm34_vm0, %v29_v13, 0.0  ;;  %v38_v17 = vsel %vm34_vm0, %v27_v14, 0.0  ;;  %v32_v21 = vmul.f32 %v620_v19, %v620_v19 }
   0x6   :  { %36 = vadd.xlane.f32.xlu0 %v35_v10  ;;  %v56_v22 = vsel %vm34_vm0, %v33_v20, 0.0 }
   0x7   :  { %v53_v23 = vsel %vm34_vm0, %v32_v21, 0.0 }
   0xd   :  { %51 = vadd.xlane.f32.xlu2 %v50_v15  ;;  %45 = vadd.xlane.f32.xlu1 %v44_v16 }
   0xe   :  { %39 = vadd.xlane.f32.xlu0 %v38_v17 }
  0x15   :  { %57 = vadd.xlane.f32.xlu1 %v56_v22 }
  0x16   :  { %54 = vadd.xlane.f32.xlu0 %v53_v23 }
  0x78   :  { %v49_v24 = vpop.xlane.xlu2 %48  ;;  %v43_v25 = vpop.xlane.xlu1 %42 }
  0x79   :  { %v63_v26 = vmax.f32 %v49_v24, 1e-30  ;;  %v61_v27 = vmax.f32 %v43_v25, 1e-30  ;;  %v37_v28 = vpop.xlane.xlu0 %36 }
  0x7a   :  { %v59_v29 = vmax.f32 %v37_v28, 1e-30 }
  0x7b   :  { %486 = vrsqrt.f32 %v63_v26  ;;  %vm113_vm1 = vweird.f32 %v63_v26  ;;  %vm93_vm3 = vweird.f32 %v61_v27 }
  0x7c   :  { %488 = vrsqrt.f32 %v61_v27  ;;  %vm73_vm7 = vweird.f32 %v59_v29 }
  0x7d   :  { %490 = vrsqrt.f32 %v59_v29 }
  0x80   :  { %v52_v30 = vpop.xlane.xlu2 %51  ;;  %v46_v31 = vpop.xlane.xlu1 %45 }
  0x81   :  { %v487_v32 = vpop.eup %486  ;;  %v628_v33 = vmax.f32 %v52_v30, 1e-30  ;;  %v630_v34 = vmax.f32 %v46_v31, 1e-30  ;;  %v40_v35 = vpop.xlane.xlu0 %39 }
  0x82   :  { %v489_v36 = vpop.eup %488  ;;  %v108_v37 = vmul.f32 %v487_v32, %v63_v26  ;;  %v632_v38 = vmax.f32 %v40_v35, 1e-30  ;;  %vm114_vm2 = vweird.f32 %v487_v32 }
  0x83   :  { %v491_v39 = vpop.eup %490  ;;  %v88_v40 = vmul.f32 %v489_v36, %v61_v27  ;;  %492 = vrsqrt.f32 %v628_v33  ;;  %vm94_vm4 = vweird.f32 %v489_v36  ;;  %vm115_vm6 = vmor %vm113_vm1, %vm114_vm2  ;;  %vm123_vm10 = vweird.f32 %v628_v33 }
  0x84   :  { %v109_v41 = vmul.f32 %v487_v32, %v108_v37  ;;  %v68_v42 = vmul.f32 %v491_v39, %v59_v29  ;;  %494 = vrsqrt.f32 %v630_v34  ;;  %vm74_vm5 = vweird.f32 %v491_v39  ;;  %vm95_vm8 = vmor %vm93_vm3, %vm94_vm4 }
  0x85   :  { %v89_v43 = vmul.f32 %v489_v36, %v88_v40  ;;  %496 = vrsqrt.f32 %v632_v38  ;;  %vm75_vm9 = vmor %vm73_vm7, %vm74_vm5  ;;  %vm103_vm12 = vweird.f32 %v630_v34  ;;  %vm83_vm14 = vweird.f32 %v632_v38 }
  0x86   :  { %v110_v44 = vmul.f32 0.5, %v109_v41  ;;  %v69_v45 = vmul.f32 %v491_v39, %v68_v42 }
  0x87   :  { %v90_v46 = vmul.f32 0.5, %v89_v43 }
  0x88   :  { %v111_v47 = vsub.f32 1.5, %v110_v44  ;;  %v70_v48 = vmul.f32 0.5, %v69_v45  ;;  %v58_v49 = vpop.xlane.xlu1 %57 }
  0x89   :  { %v493_v50 = vpop.eup %492  ;;  %v91_v51 = vsub.f32 1.5, %v90_v46  ;;  %v637_v52 = vmax.f32 %v58_v49, 1e-30  ;;  %v55_v5 = vpop.xlane.xlu0 %54 }
  0x8a   :  { %v495_v53 = vpop.eup %494  ;;  %v112_v54 = vmul.f32 %v487_v32, %v111_v47  ;;  %v71_v55 = vsub.f32 1.5, %v70_v48  ;;  %v118_v56 = vmul.f32 %v493_v50, %v628_v33  ;;  %vm124_vm11 = vweird.f32 %v493_v50 }
  0x8b   :  { %v497_v57 = vpop.eup %496  ;;  %v92_v58 = vmul.f32 %v489_v36, %v91_v51  ;;  %v98_v59 = vmul.f32 %v495_v53, %v630_v34  ;;  %498 = vrsqrt.f32 %v637_v52  ;;  %v655_v21 = vmax.f32 %v55_v5, 1e-30  ;;  %vm125_vm1 = vmor %vm123_vm10, %vm124_vm11 }
  0x8c   :  { %v643_v60 = vsel %vm115_vm6, %v487_v32, %v112_v54  ;;  %v72_v61 = vmul.f32 %v491_v39, %v71_v55  ;;  %v119_v62 = vmul.f32 %v493_v50, %v118_v56  ;;  %v78_v63 = vmul.f32 %v497_v57, %v632_v38 }
  0x8d   :  { %v647_v3 = vsel %vm95_vm8, %v489_v36, %v92_v58  ;;  %v99_v4 = vmul.f32 %v495_v53, %v98_v59  ;;  %v151_v13 = vmul.f32 %v643_v60, %v63_v26  ;;  %vm104_vm13 = vweird.f32 %v495_v53 }
  0x8e   :  { %v149_v8 = vmul.f32 %v647_v3, %v61_v27  ;;  %v651_v9 = vsel %vm75_vm9, %v491_v39, %v72_v61  ;;  %v120_v10 = vmul.f32 0.5, %v119_v62  ;;  %v79_v12 = vmul.f32 %v497_v57, %v78_v63  ;;  %vm105_vm2 = vmor %vm103_vm12, %vm104_vm13 }
  0x8f   :  { %v147_v14 = vmul.f32 %v651_v9, %v59_v29  ;;  %v100_v15 = vmul.f32 0.5, %v99_v4  ;;  %vm84_vm15 = vweird.f32 %v497_v57  ;;  %v660_v27 = vclamps-f32 %v151_v13, 0.9999999 }
  0x90   :  { %v480_v16 = vclamps-f32 %v149_v8, 0.9999999  ;;  %v121_v17 = vsub.f32 1.5, %v120_v10  ;;  %v80_v20 = vmul.f32 0.5, %v79_v12  ;;  %500 = vrsqrt.f32 %v655_v21  ;;  %vm85_vm3 = vmor %vm83_vm14, %vm84_vm15  ;;  %v714_v10 = vld [vmem:[%s1016_s1] sm:$0x3] }
  0x91   :  { %v499_v22 = vpop.eup %498  ;;  %v101_v23 = vsub.f32 1.5, %v100_v15  ;;  %v662_v28 = vclamps-f32 %v147_v14, 0.9999999  ;;  %vm143_vm4 = vweird.f32 %v637_v52  ;;  %v684_v45 = vsub.f32 0.0, %v660_v27 }
  0x92   :  { %v122_v24 = vmul.f32 %v493_v50, %v121_v17  ;;  %v81_v25 = vsub.f32 1.5, %v80_v20  ;;  %v138_v26 = vmul.f32 %v499_v22, %v637_v52  ;;  %v245_v30 = vsub.f32 0.0, %v480_v16 }
  0x93   :  { %v102_v29 = vmul.f32 %v495_v53, %v101_v23  ;;  %v189_v39 = vadd.f32 1.0, %v480_v16  ;;  %v192_v40 = vmul.f32 -0.5, %v480_v16  ;;  %vm144_vm5 = vweird.f32 %v499_v22 }
  0x94   :  { %v668_v31 = vsel %vm125_vm1, %v493_v50, %v122_v24  ;;  %v82_v32 = vmul.f32 %v497_v57, %v81_v25  ;;  %v139_v35 = vmul.f32 %v499_v22, %v138_v26  ;;  %v269_v47 = vadd.f32 1.0, %v245_v30  ;;  %vm145_vm7 = vmor %vm143_vm4, %vm144_vm5 }
  0x95   :  { %v152_v36 = vmul.f32 %v668_v31, %v628_v33  ;;  %v672_v37 = vsel %vm105_vm2, %v495_v53, %v102_v29  ;;  %502 = vlog2.f32 %v189_v39  ;;  %v195_v33 = vand.u32 2147483647, %v480_v16 }
  0x96   :  { %v150_v41 = vmul.f32 %v672_v37, %v630_v34  ;;  %v678_v42 = vsel %vm85_vm3, %v497_v57, %v82_v32  ;;  %v140_v43 = vmul.f32 0.5, %v139_v35  ;;  %v501_v48 = vpop.eup %500  ;;  %v687_v49 = vsub.f32 0.0, %v662_v28 }
  0x97   :  { %v148_v44 = vmul.f32 %v678_v42, %v632_v38  ;;  %v689_v34 = vclamps-f32 %v152_v36, 0.9999999  ;;  %v193_v50 = vadd.f32 1.0, %v192_v40  ;;  %v272_v51 = vmul.f32 -0.5, %v245_v30 }
  0x98   :  { %v141_v46 = vsub.f32 1.5, %v140_v43  ;;  %v691_v53 = vclamps-f32 %v150_v41, 0.9999999  ;;  %v128_v54 = vmul.f32 %v501_v48, %v655_v21  ;;  %vm133_vm6 = vweird.f32 %v655_v21 }
  0x99   :  { %v695_v55 = vclamps-f32 %v148_v44, 0.9999999  ;;  %vm699_vm8 = vcmp.lt.f32.partialorder %v195_v33, 0.0004427343  ;;  %504 = vlog2.f32 %v269_v47  ;;  %v273_v57 = vadd.f32 1.0, %v272_v51 }
  0x9a   :  { %v142_v38 = vmul.f32 %v499_v22, %v141_v46  ;;  %v129_v59 = vmul.f32 %v501_v48, %v128_v54  ;;  %v275_v61 = vand.u32 2147483647, %v245_v30  ;;  %v171_v62 = vadd.f32 1.0, %v662_v28 }
  0x9b   :  { %v503_v63 = vpop.eup %502  ;;  %v707_v4 = vsub.f32 0.0, %v689_v34  ;;  %v194_v8 = vmul.f32 %v480_v16, %v193_v50  ;;  %v174_v12 = vmul.f32 -0.5, %v662_v28  ;;  %v718_v13 = vsub.f32 0.0, %v691_v53 }
  0x9c   :  { %v703_v58 = vsel %vm145_vm7, %v499_v22, %v142_v38  ;;  %v130_v14 = vmul.f32 0.5, %v129_v59  ;;  %vm134_vm9 = vweird.f32 %v501_v48  ;;  %506 = vlog2.f32 %v171_v62 }
  0x9d   :  { %v154_v5 = vmul.f32 %v703_v58, %v637_v52  ;;  %v721_v15 = vsub.f32 0.0, %v695_v55  ;;  %v191_v17 = vmul.f32 0.6931472, %v503_v63  ;;  %v251_v52 = vadd.f32 1.0, %v687_v49  ;;  %vm135_vm11 = vmor %vm133_vm6, %vm134_vm9 }
  0x9e   :  { %v254_v16 = vmul.f32 -0.5, %v687_v49  ;;  %v131_v20 = vsub.f32 1.5, %v130_v14  ;;  %v274_v22 = vmul.f32 %v273_v57, %v245_v30  ;;  %vm725_vm10 = vcmp.lt.f32.partialorder %v275_v61, 0.0004427343 }
  0x9f   :  { %v730_v24 = vperm.slane %v714_v10, 0  ;;  %v505_v25 = vpop.eup %504  ;;  %v732_v26 = vclamps-f32 %v154_v5, 0.9999999  ;;  %v175_v29 = vadd.f32 1.0, %v174_v12  ;;  %v177_v32 = vand.u32 2147483647, %v662_v28 }
  0xa0   :  { %508 = vlog2.f32 %v251_v52  ;;  %v132_v35 = vmul.f32 %v501_v48, %v131_v20  ;;  %v271_v36 = vmul.f32 0.6931472, %v505_v25  ;;  %v257_v39 = vand.u32 2147483647, %v687_v49 }
  0xa1   :  { %v216_v30 = vadd.f32 1.0, %v689_v34  ;;  %v197_v40 = vsel %vm699_vm8, %v194_v8, %v191_v17  ;;  %v255_v41 = vadd.f32 1.0, %v254_v16  ;;  %v219_v43 = vmul.f32 -0.5, %v689_v34 }
  0xa2   :  { %v296_v44 = vadd.f32 1.0, %v707_v4  ;;  %v507_v33 = vpop.eup %506  ;;  %v744_v46 = vsel %vm135_vm11, %v501_v48, %v132_v35  ;;  %v277_v47 = vsel %vm725_vm10, %v274_v22, %v271_v36  ;;  %vm363_vm12 = vcmask 257024  }
  0xa3   :  { %510 = vlog2.f32 %v216_v30  ;;  %v299_v50 = vmul.f32 -0.5, %v707_v4  ;;  %v153_v51 = vmul.f32 %v744_v46, %v655_v21  ;;  %v325_v38 = vsub.f32 %v197_v40, %v277_v47 }
  0xa4   :  { %v173_v54 = vmul.f32 0.6931472, %v507_v33  ;;  %v222_v56 = vand.u32 2147483647, %v689_v34  ;;  %v176_v57 = vmul.f32 %v662_v28, %v175_v29  ;;  %vm753_vm13 = vcmp.lt.f32.partialorder %v177_v32, 0.0004427343 }
  0xa5   :  { %vm757_vm14 = vcmp.lt.f32.partialorder %v257_v39, 0.0004427343  ;;  %512 = vlog2.f32 %v296_v44  ;;  %v333_v62 = vmul.f32 0.5, %v325_v38  ;;  %v220_v63 = vadd.f32 1.0, %v219_v43 }
  0xa6   :  { %v509_v61 = vpop.eup %508  ;;  %v300_v5 = vadd.f32 1.0, %v299_v50  ;;  %v302_v21 = vand.u32 2147483647, %v707_v4  ;;  %v762_v8 = vclamps-f32 %v153_v51, 0.9999999  ;;  %v256_v28 = vmul.f32 %v255_v41, %v687_v49 }
  0xa7   :  { %v253_v12 = vmul.f32 0.6931472, %v509_v61  ;;  %v198_v14 = vadd.f32 1.0, %v691_v53  ;;  %v341_v17 = vmul.f32 %v333_v62, %v647_v3  ;;  %v179_v52 = vsel %vm753_vm13, %v176_v57, %v173_v54 }
  0xa8   :  { %vm769_vm15 = vcmp.lt.f32.partialorder %v222_v56, 0.0004427343  ;;  %v201_v20 = vmul.f32 -0.5, %v691_v53  ;;  %v278_v49 = vadd.f32 1.0, %v718_v13  ;;  %v281_v25 = vmul.f32 -0.5, %v718_v13 }
  0xa9   :  { %v511_v22 = vpop.eup %510  ;;  %v259_v23 = vsel %vm757_vm14, %v256_v28, %v253_v12  ;;  %514 = vlog2.f32 %v198_v14  ;;  %v779_v3 = vmul.f32 %v341_v17, %v572_v1  ;;  %v221_v32 = vmul.f32 %v689_v34, %v220_v63 }
  0xaa   :  { %v323_v29 = vsub.f32 %v179_v52, %v259_v23  ;;  %v301_v35 = vmul.f32 %v300_v5, %v707_v4  ;;  %v784_v39 = vsub.f32 0.0, %v762_v8  ;;  %v218_v30 = vmul.f32 0.6931472, %v511_v22 }
  0xab   :  { %v513_v36 = vpop.eup %512  ;;  %vm786_vm1 = vcmp.lt.f32.partialorder %v302_v21, 0.0004427343  ;;  %516 = vlog2.f32 %v278_v49  ;;  %v377_v41 = vmul.f32 %v730_v24, %v779_v3  ;;  %v357_v1 = vpack.c.bf16 %v779_v3, %v779_v3 }
  0xac   :  { %v331_v43 = vmul.f32 0.5, %v323_v29  ;;  %v204_v34 = vand.u32 2147483647, %v691_v53  ;;  %v298_v4 = vmul.f32 0.6931472, %v513_v36  ;;  %v202_v44 = vadd.f32 1.0, %v201_v20 }
  0xad   :  { %v282_v33 = vadd.f32 1.0, %v281_v25  ;;  %v284_v47 = vand.u32 2147483647, %v718_v13  ;;  %v389_v50 = vsel %vm34_vm0, %v377_v41, 0.0  ;;  %366 = vst.msk [vmem:[%s1017_s3 + $0x8] sm:$0xf] %vm363_vm12, %v357_v1  ;;  %v224_v57 = vsel %vm769_vm15, %v221_v32, %v218_v30 }
  0xae   :  { %v339_v51 = vmul.f32 %v331_v43, %v651_v9  ;;  %v180_v38 = vadd.f32 1.0, %v695_v55  ;;  %v183_v54 = vmul.f32 -0.5, %v695_v55  ;;  %390 = vadd.xlane.f32.xlu1 %v389_v50  ;;  %v304_v59 = vsel %vm786_vm1, %v301_v35, %v298_v4 }
  0xaf   :  { %v515_v56 = vpop.eup %514  ;;  %v260_v48 = vadd.f32 1.0, %v721_v15  ;;  %v263_v61 = vmul.f32 -0.5, %v721_v15  ;;  %v328_v63 = vsub.f32 %v224_v57, %v304_v59  ;;  %v186_v9 = vand.u32 2147483647, %v695_v55 }
  0xb0   :  { %v347_v62 = vmul.f32 %v339_v51, %v577_v2  ;;  %518 = vlog2.f32 %v180_v38  ;;  %v200_v21 = vmul.f32 0.6931472, %v515_v56  ;;  %vm812_vm2 = vcmp.lt.f32.partialorder %v204_v34, 0.0004427343 }
  0xb1   :  { %v517_v5 = vpop.eup %516  ;;  %v184_v28 = vadd.f32 1.0, %v183_v54  ;;  %520 = vlog2.f32 %v260_v48  ;;  %v336_v52 = vmul.f32 0.5, %v328_v63  ;;  %v264_v16 = vadd.f32 1.0, %v263_v61 }
  0xb2   :  { %v375_v14 = vmul.f32 %v730_v24, %v347_v62  ;;  %v355_v17 = vpack.c.bf16 %v347_v62, %v347_v62  ;;  %v203_v20 = vmul.f32 %v691_v53, %v202_v44  ;;  %v280_v2 = vmul.f32 0.6931472, %v517_v5 }
  0xb3   :  { %v283_v22 = vmul.f32 %v282_v33, %v718_v13  ;;  %vm285_vm3 = vcmp.lt.f32.partialorder %v284_v47, 0.0004427343  ;;  %v344_v49 = vmul.f32 %v336_v52, %v668_v31  ;;  %vm825_vm4 = vcmp.lt.f32.partialorder %v186_v9, 0.0004427343 }
  0xb4   :  { %v383_v23 = vsel %vm34_vm0, %v375_v14, 0.0  ;;  %364 = vst.msk [vmem:[%s1017_s3] sm:$0xf] %vm363_vm12, %v355_v17  ;;  %v207_v29 = vadd.f32 1.0, %v660_v27  ;;  %v206_v53 = vsel %vm812_vm2, %v203_v20, %v200_v21  ;;  %v185_v32 = vmul.f32 %v695_v55, %v184_v28 }
  0xb5   :  { %384 = vadd.xlane.f32.xlu2 %v383_v23  ;;  %v286_v13 = vsel %vm285_vm3, %v283_v22, %v280_v2  ;;  %v266_v35 = vand.u32 2147483647, %v721_v15  ;;  %v835_v30 = vmul.f32 %v344_v49, %v588_v6  ;;  %v265_v40 = vmul.f32 %v264_v16, %v721_v15 }
  0xb6   :  { %v519_v36 = vpop.eup %518  ;;  %v326_v31 = vsub.f32 %v206_v53, %v286_v13  ;;  %522 = vlog2.f32 %v207_v29  ;;  %v839_v43 = vperm.slane %v714_v10, 1  ;;  %v210_v34 = vmul.f32 -0.5, %v660_v27 }
  0xb7   :  { %v521_v41 = vpop.eup %520  ;;  %v182_v1 = vmul.f32 0.6931472, %v519_v36  ;;  %v287_v4 = vadd.f32 1.0, %v684_v45  ;;  %v360_v55 = vpack.c.bf16 %v835_v30, %v835_v30  ;;  %v380_v6 = vmul.f32 %v730_v24, %v835_v30 }
  0xb8   :  { %v334_v44 = vmul.f32 0.5, %v326_v31  ;;  %v262_v33 = vmul.f32 0.6931472, %v521_v41  ;;  %vm267_vm5 = vcmp.lt.f32.partialorder %v266_v35, 0.0004427343  ;;  %v290_v38 = vmul.f32 -0.5, %v684_v45 }
  0xb9   :  { %v188_v15 = vsel %vm825_vm4, %v185_v32, %v182_v1  ;;  %v213_v47 = vand.u32 2147483647, %v660_v27  ;;  %524 = vlog2.f32 %v287_v4  ;;  %369 = vst.msk [vmem:[%s1017_s3 + $0x14] sm:$0xf] %vm363_vm12, %v360_v55  ;;  %v398_v10 = vsel %vm34_vm0, %v380_v6, 0.0 }
  0xba   :  { %v342_v50 = vmul.f32 %v334_v44, %v672_v37  ;;  %v268_v51 = vsel %vm267_vm5, %v265_v40, %v262_v33  ;;  %399 = vadd.xlane.f32.xlu1 %v398_v10  ;;  %v211_v56 = vadd.f32 1.0, %v210_v34  ;;  %v225_v57 = vadd.f32 1.0, %v762_v8 }
  0xbb   :  { %v324_v54 = vsub.f32 %v188_v15, %v268_v51  ;;  %v228_v59 = vmul.f32 -0.5, %v762_v8  ;;  %v860_v61 = vsub.f32 0.0, %v732_v26  ;;  %v291_v9 = vadd.f32 1.0, %v290_v38 }
  0xbc   :  { %v523_v48 = vpop.eup %522  ;;  %v350_v63 = vmul.f32 %v342_v50, %v593_v7  ;;  %v305_v5 = vadd.f32 1.0, %v784_v39  ;;  %v426_v21 = vmul.f32 %v839_v43, %v347_v62  ;;  %v293_v12 = vand.u32 2147483647, %v684_v45 }
  0xbd   :  { %v332_v37 = vmul.f32 0.5, %v324_v54  ;;  %526 = vlog2.f32 %v225_v57  ;;  %v209_v17 = vmul.f32 0.6931472, %v523_v48  ;;  %vm867_vm6 = vcmp.lt.f32.partialorder %v213_v47, 0.0004427343 }
  0xbe   :  { %v358_v28 = vpack.c.bf16 %v350_v63, %v350_v63  ;;  %v378_v14 = vmul.f32 %v730_v24, %v350_v63  ;;  %v212_v20 = vmul.f32 %v660_v27, %v211_v56  ;;  %v229_v2 = vadd.f32 1.0, %v228_v59 }
  0xbf   :  { %v525_v16 = vpop.eup %524  ;;  %v340_v7 = vmul.f32 %v332_v37, %v678_v42  ;;  %528 = vlog2.f32 %v305_v5  ;;  %v292_v23 = vmul.f32 %v291_v9, %v684_v45  ;;  %v308_v49 = vmul.f32 -0.5, %v784_v39 }
  0xc0   :  { %367 = vst.msk [vmem:[%s1017_s3 + $0xc] sm:$0xf] %vm363_vm12, %v358_v28  ;;  %v392_v62 = vsel %vm34_vm0, %v378_v14, 0.0  ;;  %v289_v22 = vmul.f32 0.6931472, %v525_v16  ;;  %v434_v27 = vsel %vm34_vm0, %v426_v21, 0.0  ;;  %v215_v29 = vsel %vm867_vm6, %v212_v20, %v209_v17 }
  0xc1   :  { %393 = vadd.xlane.f32.xlu2 %v392_v62  ;;  %v881_v25 = vmul.f32 %v340_v7, %v601_v11  ;;  %vm294_vm7 = vcmp.lt.f32.partialorder %v293_v12, 0.0004427343  ;;  %v234_v42 = vadd.f32 1.0, %v732_v26  ;;  %v231_v13 = vand.u32 2147483647, %v762_v8 }
  0xc2   :  { %v295_v53 = vsel %vm294_vm7, %v292_v23, %v289_v22  ;;  %v309_v32 = vadd.f32 1.0, %v308_v49  ;;  %435 = vadd.xlane.f32.xlu1 %v434_v27  ;;  %v311_v31 = vand.u32 2147483647, %v784_v39  ;;  %v230_v41 = vmul.f32 %v762_v8, %v229_v2 }
  0xc3   :  { %v527_v35 = vpop.eup %526  ;;  %v376_v45 = vmul.f32 %v730_v24, %v881_v25  ;;  %v356_v11 = vpack.c.bf16 %v881_v25, %v881_v25  ;;  %v327_v36 = vsub.f32 %v215_v29, %v295_v53  ;;  %530 = vlog2.f32 %v234_v42 }
  0xc4   :  { %v227_v40 = vmul.f32 0.6931472, %v527_v35  ;;  %v429_v55 = vmul.f32 %v839_v43, %v350_v63  ;;  %v314_v6 = vadd.f32 1.0, %v860_v61  ;;  %v310_v33 = vmul.f32 %v309_v32, %v784_v39 }
  0xc5   :  { %v529_v1 = vpop.eup %528  ;;  %v386_v34 = vsel %vm34_vm0, %v376_v45, 0.0  ;;  %365 = vst.msk [vmem:[%s1017_s3 + $0x4] sm:$0xf] %vm363_vm12, %v356_v11  ;;  %v335_v4 = vmul.f32 0.5, %v327_v36  ;;  %v237_v8 = vmul.f32 -0.5, %v732_v26  ;;  %v317_v15 = vmul.f32 -0.5, %v860_v61 }
  0xc6   :  { %387 = vadd.xlane.f32.xlu0 %v386_v34  ;;  %v307_v44 = vmul.f32 0.6931472, %v529_v1  ;;  %vm232_vm8 = vcmp.lt.f32.partialorder %v231_v13, 0.0004427343  ;;  %vm312_vm9 = vcmp.lt.f32.partialorder %v311_v31, 0.0004427343  ;;  %532 = vlog2.f32 %v314_v6 }
  0xc7   :  { %v343_v47 = vmul.f32 %v335_v4, %v643_v60  ;;  %v233_v10 = vsel %vm232_vm8, %v230_v41, %v227_v40  ;;  %v443_v56 = vsel %vm34_vm0, %v429_v55, 0.0  ;;  %v238_v57 = vadd.f32 1.0, %v237_v8 }
  0xc8   :  { %v313_v50 = vsel %vm312_vm9, %v310_v33, %v307_v44  ;;  %v240_v39 = vand.u32 2147483647, %v732_v26  ;;  %v318_v59 = vadd.f32 1.0, %v317_v15  ;;  %v320_v60 = vand.u32 2147483647, %v860_v61 }
  0xc9   :  { %v351_v51 = vmul.f32 %v343_v47, %v567_v0  ;;  %v329_v38 = vsub.f32 %v233_v10, %v313_v50  ;;  %v531_v54 = vpop.eup %530  ;;  %v239_v12 = vmul.f32 %v732_v26, %v238_v57  ;;  %v427_v23 = vmul.f32 %v839_v43, %v881_v25 }
  0xca   :  { %444 = vadd.xlane.f32.xlu1 %v443_v56  ;;  %v236_v5 = vmul.f32 0.6931472, %v531_v54  ;;  %v319_v14 = vmul.f32 %v318_v59, %v860_v61  ;;  %vm241_vm10 = vcmp.lt.f32.partialorder %v240_v39, 0.0004427343  ;;  %vm321_vm11 = vcmp.lt.f32.partialorder %v320_v60, 0.0004427343 }
  0xcb   :  { %v359_v48 = vpack.c.bf16 %v351_v51, %v351_v51  ;;  %v379_v63 = vmul.f32 %v730_v24, %v351_v51  ;;  %v337_v9 = vmul.f32 0.5, %v329_v38  ;;  %v437_v29 = vsel %vm34_vm0, %v427_v23, 0.0 }
  0xcc   :  { %v533_v37 = vpop.eup %532  ;;  %v242_v52 = vsel %vm241_vm10, %v239_v12, %v236_v5  ;;  %v431_v53 = vmul.f32 %v839_v43, %v835_v30 }
  0xcd   :  { %368 = vst.msk [vmem:[%s1017_s3 + $0x10] sm:$0xf] %vm363_vm12, %v359_v48  ;;  %v395_v0 = vsel %vm34_vm0, %v379_v63, 0.0  ;;  %v345_v21 = vmul.f32 %v337_v9, %v744_v46  ;;  %v316_v28 = vmul.f32 0.6931472, %v533_v37 }
  0xce   :  { %396 = vadd.xlane.f32.xlu0 %v395_v0  ;;  %v449_v32 = vsel %vm34_vm0, %v431_v53, 0.0 }
  0xcf   :  { %v353_v17 = vmul.f32 %v345_v21, %v620_v19  ;;  %v322_v16 = vsel %vm321_vm11, %v319_v14, %v316_v28 }
  0xd0   :  { %v330_v2 = vsub.f32 %v242_v52, %v322_v16 }
  0xd1   :  { %v381_v7 = vmul.f32 %v730_v24, %v353_v17  ;;  %v361_v20 = vpack.c.bf16 %v353_v17, %v353_v17  ;;  %v432_v62 = vmul.f32 %v839_v43, %v353_v17 }
  0xd2   :  { %v338_v26 = vmul.f32 0.5, %v330_v2 }
  0xd3   :  { %v401_v46 = vsel %vm34_vm0, %v381_v7, 0.0  ;;  %370 = vst.msk [vmem:[%s1017_s3 + $0x18] sm:$0xf] %vm363_vm12, %v361_v20  ;;  %v452_v19 = vsel %vm34_vm0, %v432_v62, 0.0 }
  0xd4   :  { %402 = vadd.xlane.f32.xlu2 %v401_v46  ;;  %453 = vadd.xlane.f32.xlu1 %v452_v19  ;;  %v346_v61 = vmul.f32 %v338_v26, %v703_v58  ;;  %v430_v58 = vmul.f32 %v839_v43, %v351_v51 }
  0xd6   :  { %v354_v22 = vmul.f32 %v346_v61, %v615_v18  ;;  %v428_v18 = vmul.f32 %v839_v43, %v779_v3  ;;  %v407_v3 = vstv %s1018_s2 }
  0xd8   :  { %v362_v49 = vpack.c.bf16 %v354_v22, %v354_v22  ;;  %v382_v27 = vmul.f32 %v730_v24, %v354_v22  ;;  %v440_v25 = vsel %vm34_vm0, %v428_v18, 0.0  ;;  %v446_v24 = vsel %vm34_vm0, %v430_v58, 0.0 }
  0xd9   :  { %v433_v13 = vmul.f32 %v839_v43, %v354_v22 }
  0xda   :  { %371 = vst.msk [vmem:[%s1017_s3 + $0x1c] sm:$0xf] %vm363_vm12, %v362_v49  ;;  %v404_v42 = vsel %vm34_vm0, %v382_v27, 0.0  ;;  %vm416_vm12 = vcmask 7168  }
  0xdb   :  { %405 = vadd.xlane.f32.xlu0 %v404_v42  ;;  %v455_v35 = vsel %vm34_vm0, %v433_v13, 0.0 }
  0xdc   :  { %438 = vadd.xlane.f32.xlu2 %v437_v29 }
  0xe3   :  { %441 = vadd.xlane.f32.xlu0 %v440_v25 }
  0xe4   :  { %447 = vadd.xlane.f32.xlu2 %v446_v24 }
  0xeb   :  { %450 = vadd.xlane.f32.xlu0 %v449_v32 }
  0xec   :  { %456 = vadd.xlane.f32.xlu2 %v455_v35 }
 0x121   :  { %v391_v45 = vpop.xlane.xlu1 %390 }
 0x122   :  { %v410_v11 = vadd.f32 %v407_v3, %v391_v45 }
 0x124   :  { %419 = vst.msk [vmem:[%s1019_s4 + $0x10] sm:$0xff] %vm416_vm12, %v410_v11 }
 0x128   :  { %v385_v30 = vpop.xlane.xlu2 %384 }
 0x129   :  { %v408_v43 = vadd.f32 %v407_v3, %v385_v30 }
 0x12b   :  { %417 = vst.msk [vmem:[%s1019_s4] sm:$0xff] %vm416_vm12, %v408_v43 }
 0x12d   :  { %v400_v36 = vpop.xlane.xlu1 %399 }
 0x12e   :  { %v413_v31 = vadd.f32 %v407_v3, %v400_v36 }
 0x130   :  { %422 = vst.msk [vmem:[%s1019_s4 + $0x28] sm:$0xff] %vm416_vm12, %v413_v31 }
 0x134   :  { %v394_v40 = vpop.xlane.xlu2 %393 }
 0x135   :  { %v411_v41 = vadd.f32 %v407_v3, %v394_v40  ;;  %v436_v1 = vpop.xlane.xlu1 %435 }
 0x136   :  { %458 = vst.msk [vmem:[%s1020_s5] sm:$0xff] %vm416_vm12, %v436_v1 }
 0x137   :  { %420 = vst.msk [vmem:[%s1019_s4 + $0x18] sm:$0xff] %vm416_vm12, %v411_v41 }
 0x139   :  { %v388_v34 = vpop.xlane.xlu0 %387 }
 0x13a   :  { %v409_v4 = vadd.f32 %v407_v3, %v388_v34 }
 0x13c   :  { %418 = vst.msk [vmem:[%s1019_s4 + $0x8] sm:$0xff] %vm416_vm12, %v409_v4 }
 0x13d   :  { %v445_v55 = vpop.xlane.xlu1 %444 }
 0x13e   :  { %461 = vst.msk [vmem:[%s1020_s5 + $0x18] sm:$0xff] %vm416_vm12, %v445_v55 }
 0x141   :  { %v397_v6 = vpop.xlane.xlu0 %396 }
 0x142   :  { %v412_v44 = vadd.f32 %v407_v3, %v397_v6 }
 0x144   :  { %421 = vst.msk [vmem:[%s1019_s4 + $0x20] sm:$0xff] %vm416_vm12, %v412_v44 }
 0x147   :  { %v403_v33 = vpop.xlane.xlu2 %402  ;;  %v454_v8 = vpop.xlane.xlu1 %453 }
 0x148   :  { %v414_v15 = vadd.f32 %v407_v3, %v403_v33  ;;  %464 = vst.msk [vmem:[%s1020_s5 + $0x30] sm:$0xff] %vm416_vm12, %v454_v8 }
 0x14a   :  { %423 = vst.msk [vmem:[%s1019_s4 + $0x30] sm:$0xff] %vm416_vm12, %v414_v15 }
 0x14e   :  { %v406_v10 = vpop.xlane.xlu0 %405 }
 0x14f   :  { %v439_v47 = vpop.xlane.xlu2 %438  ;;  %v415_v50 = vadd.f32 %v407_v3, %v406_v10 }
 0x150   :  { %459 = vst.msk [vmem:[%s1020_s5 + $0x8] sm:$0xff] %vm416_vm12, %v439_v47 }
 0x151   :  { %424 = vst.msk [vmem:[%s1019_s4 + $0x38] sm:$0xff] %vm416_vm12, %v415_v50 }
 0x156   :  { %v442_v38 = vpop.xlane.xlu0 %441 }
 0x157   :  { %v448_v51 = vpop.xlane.xlu2 %447  ;;  %460 = vst.msk [vmem:[%s1020_s5 + $0x10] sm:$0xff] %vm416_vm12, %v442_v38 }
 0x158   :  { %462 = vst.msk [vmem:[%s1020_s5 + $0x20] sm:$0xff] %vm416_vm12, %v448_v51 }
 0x15e   :  { %v451_v56 = vpop.xlane.xlu0 %450 }
 0x15f   :  { %v457_v54 = vpop.xlane.xlu2 %456  ;;  %463 = vst.msk [vmem:[%s1020_s5 + $0x28] sm:$0xff] %vm416_vm12, %v451_v56 }
 0x160   :  { %465 = vst.msk [vmem:[%s1020_s5 + $0x38] sm:$0xff] %vm416_vm12, %v457_v54 }

</bundles_post_ra>
